<compile_context>
chip_gen: v6e
topology: v6e:2x2x1
jax: 0.10.0
libtpu: 0.0.40
codegen_flags: <defaults>
</compile_context>

<pallas_src>
import math

import jax
import jax.numpy as jnp
from jax import lax
from jax.experimental import pallas as pl
from jax.experimental.pallas import tpu as pltpu


def _round_up(x, m):
    return ((x + m - 1) // m) * m


def _ffn_kernel(x_ref, w0_ref, b0_ref, w1_ref, b1_ref, o_ref):
    # x_ref:  (TM, Cp)  bf16 token tile
    # w0_ref: (Fp, Cp)  bf16 lin0 weight (PyTorch (out, in) layout)
    # b0_ref: (1, Fp)   f32
    # w1_ref: (Cp, Fp)  bf16 lin1 weight (PyTorch (out, in) layout)
    # b1_ref: (1, Cp)   f32
    # o_ref:  (TM, Cp)  output tile
    x = x_ref[...]

    # lin0: contract on Cp (axis 1 of x, axis 1 of w0) -> (TM, Fp), f32 accum.
    h = lax.dot_general(
        x, w0_ref[...],
        dimension_numbers=(((1,), (1,)), ((), ())),
        preferred_element_type=jnp.float32,
    )
    h = jnp.maximum(h + b0_ref[...], 0.0)          # bias + ReLU in f32
    # dropout(p) in eval mode == identity

    # lin1: contract on Fp (axis 1 of h, axis 1 of w1) -> (TM, Cp), f32 accum.
    out = lax.dot_general(
        h.astype(w1_ref.dtype), w1_ref[...],
        dimension_numbers=(((1,), (1,)), ((), ())),
        preferred_element_type=jnp.float32,
    )
    o_ref[...] = (out + b1_ref[...]).astype(o_ref.dtype)


def feed_forward(x, w0, b0, w1, b1, *, tm=256, compute_dtype=jnp.bfloat16):
    """x: (N, L, C); w0: (F, C); b0: (F,); w1: (C, F); b1: (C,)."""
    N, L, C = x.shape
    F = w0.shape[0]
    M = N * L

    # Lane-dense padding (multiples of 128 on the contraction / lane axes).
    Cp = _round_up(C, 128)
    Fp = _round_up(F, 128)

    # Token-tile size: at least 8 (sublane), at most tm; pad M to a multiple.
    tm_eff = min(tm, _round_up(M, 8))
    Mp = _round_up(M, tm_eff)

    cbytes = jnp.dtype(compute_dtype).itemsize
    obytes = jnp.dtype(x.dtype).itemsize

    x2d = jnp.pad(x.reshape(M, C), ((0, Mp - M), (0, Cp - C))).astype(compute_dtype)
    w0p = jnp.pad(w0, ((0, Fp - F), (0, Cp - C))).astype(compute_dtype)   # (Fp, Cp)
    w1p = jnp.pad(w1, ((0, Cp - C), (0, Fp - F))).astype(compute_dtype)   # (Cp, Fp)
    b0p = jnp.pad(b0, (0, Fp - F)).astype(jnp.float32).reshape(1, Fp)
    b1p = jnp.pad(b1, (0, Cp - C)).astype(jnp.float32).reshape(1, Cp)

    grid = (Mp // tm_eff,)

    cost = pl.CostEstimate(
        flops=2 * Mp * Cp * Fp * 2,                       # two matmuls
        transcendentals=0,
        bytes_accessed=(Mp * Cp * cbytes                  # x in
                        + Fp * Cp * cbytes + Cp * Fp * cbytes  # weights
                        + Fp * 4 + Cp * 4                 # biases
                        + Mp * Cp * obytes),              # out
    )

    out2d = pl.pallas_call(
        _ffn_kernel,
        out_shape=jax.ShapeDtypeStruct((Mp, Cp), x.dtype),
        grid=grid,
        in_specs=[
            pl.BlockSpec((tm_eff, Cp), lambda i: (i, 0)),   # x tile
            pl.BlockSpec((Fp, Cp), lambda i: (0, 0)),       # w0 (resident)
            pl.BlockSpec((1, Fp), lambda i: (0, 0)),        # b0 (resident)
            pl.BlockSpec((Cp, Fp), lambda i: (0, 0)),       # w1 (resident)
            pl.BlockSpec((1, Cp), lambda i: (0, 0)),        # b1 (resident)
        ],
        out_specs=pl.BlockSpec((tm_eff, Cp), lambda i: (i, 0)),
        compiler_params=pltpu.CompilerParams(
            dimension_semantics=("parallel",)),
        cost_estimate=cost,
    )(x2d, w0p, b0p, w1p, b1p)

    return out2d[:M, :C].reshape(N, L, C)


def xavier_uniform(key, fan_out, fan_in, dtype=jnp.float32):
    bound = math.sqrt(6.0 / (fan_in + fan_out))
    return jax.random.uniform(key, (fan_out, fan_in), dtype=dtype,
                              minval=-bound, maxval=bound)


if __name__ == "__main__":
    # Small shapes consistent with the module: (N, L, C), hidden = feedforward_dim
    N, L, C, FF = 2, 8, 4, 32
    drop_rate = 0.1  # unused at inference

    key = jax.random.PRNGKey(0)
    kx, kw0, kw1 = jax.random.split(key, 3)

    x = jax.random.normal(kx, (N, L, C), dtype=jnp.float32)

    # lin0: Linear(C -> FF); PyTorch weight shape (out, in) = (FF, C), bias zeros
    w0 = xavier_uniform(kw0, FF, C)
    b0 = jnp.zeros((FF,), dtype=jnp.float32)
    # lin1: Linear(FF -> C); weight shape (C, FF), bias zeros
    w1 = xavier_uniform(kw1, C, FF)
    b1 = jnp.zeros((C,), dtype=jnp.float32)

    out = feed_forward(x, w0, b0, w1, b1)
    jax.block_until_ready(out)
    assert out.shape == (N, L, C)

    # Reference with identical numerics (bf16 matmuls, f32 accumulation).
    xb = x.reshape(-1, C).astype(jnp.bfloat16)
    w0b = w0.astype(jnp.bfloat16)
    w1b = w1.astype(jnp.bfloat16)
    h = jnp.maximum(
        jnp.dot(xb, w0b.T, preferred_element_type=jnp.float32) + b0, 0.0)
    ref_bf16 = (jnp.dot(h.astype(jnp.bfloat16), w1b.T,
                        preferred_element_type=jnp.float32) + b1).reshape(N, L, C)
    assert jnp.allclose(out, ref_bf16, atol=1e-4, rtol=1e-4)

    # Loose check against the full-f32 module semantics (bf16 rounding only).
    ref_f32 = (jnp.maximum(x.reshape(-1, C) @ w0.T + b0, 0.0) @ w1.T + b1
               ).reshape(N, L, C)
    assert jnp.allclose(out, ref_f32, atol=5e-2, rtol=5e-2)

    print("KERNEL_OK")
</pallas_src>

<mosaic_0001>
module attributes {stable_mosaic.version = 11 : i64} {
  func.func @_ffn_kernel(%arg0: i32, %arg1: memref<16x128xbf16, #tpu.memory_space<vmem>>, %arg2: memref<128x128xbf16, #tpu.memory_space<vmem>>, %arg3: memref<1x128xf32, #tpu.memory_space<vmem>>, %arg4: memref<128x128xbf16, #tpu.memory_space<vmem>>, %arg5: memref<1x128xf32, #tpu.memory_space<vmem>>, %arg6: memref<16x128xf32, #tpu.memory_space<vmem>>) attributes {dimension_semantics = [#tpu.dimension_semantics<parallel>], iteration_bounds = array<i64: 1>, scalar_prefetch = 0 : i64, scratch_operands = 0 : i64, tpu.core_type = #tpu.core_type<tc>, window_params = [{transform_indices = @transform_0, window_bounds = array<i64: 16, 128>}, {pipeline_mode = #tpu.pipeline_mode<synchronous>, transform_indices = @transform_1, window_bounds = array<i64: 128, 128>}, {pipeline_mode = #tpu.pipeline_mode<synchronous>, transform_indices = @transform_2, window_bounds = array<i64: 1, 128>}, {pipeline_mode = #tpu.pipeline_mode<synchronous>, transform_indices = @transform_3, window_bounds = array<i64: 128, 128>}, {pipeline_mode = #tpu.pipeline_mode<synchronous>, transform_indices = @transform_4, window_bounds = array<i64: 1, 128>}, {transform_indices = @transform_5, window_bounds = array<i64: 16, 128>}]} {
    %c0 = arith.constant 0 : index
    %c0_0 = arith.constant 0 : index
    %0 = vector.load %arg1[%c0, %c0_0] : memref<16x128xbf16, #tpu.memory_space<vmem>>, vector<16x128xbf16>
    %c0_1 = arith.constant 0 : index
    %c0_2 = arith.constant 0 : index
    %1 = vector.load %arg2[%c0_1, %c0_2] : memref<128x128xbf16, #tpu.memory_space<vmem>>, vector<128x128xbf16>
    %cst = arith.constant dense<0.000000e+00> : vector<16x128xf32>
    %2 = tpu.matmul %0, %1, %cst {dimension_numbers = #tpu.dot_dimension_numbers<[1], [1], [0], [0], [0, 0, 1, 0], [], []>} : vector<16x128xbf16>, vector<128x128xbf16>, vector<16x128xf32> -> vector<16x128xf32>
    %c0_3 = arith.constant 0 : index
    %c0_4 = arith.constant 0 : index
    %3 = vector.load %arg3[%c0_3, %c0_4] : memref<1x128xf32, #tpu.memory_space<vmem>>, vector<1x128xf32>
    %4 = vector.broadcast %3 : vector<1x128xf32> to vector<16x128xf32>
    %5 = arith.addf %2, %4 : vector<16x128xf32>
    %cst_5 = arith.constant 0.000000e+00 : f32
    %6 = vector.broadcast %cst_5 : f32 to vector<16x128xf32>
    %7 = arith.maximumf %5, %6 : vector<16x128xf32>
    %8 = arith.truncf %7 : vector<16x128xf32> to vector<16x128xbf16>
    %c0_6 = arith.constant 0 : index
    %c0_7 = arith.constant 0 : index
    %9 = vector.load %arg4[%c0_6, %c0_7] : memref<128x128xbf16, #tpu.memory_space<vmem>>, vector<128x128xbf16>
    %cst_8 = arith.constant dense<0.000000e+00> : vector<16x128xf32>
    %10 = tpu.matmul %8, %9, %cst_8 {dimension_numbers = #tpu.dot_dimension_numbers<[1], [1], [0], [0], [0, 0, 1, 0], [], []>} : vector<16x128xbf16>, vector<128x128xbf16>, vector<16x128xf32> -> vector<16x128xf32>
    %c0_9 = arith.constant 0 : index
    %c0_10 = arith.constant 0 : index
    %11 = vector.load %arg5[%c0_9, %c0_10] : memref<1x128xf32, #tpu.memory_space<vmem>>, vector<1x128xf32>
    %12 = vector.broadcast %11 : vector<1x128xf32> to vector<16x128xf32>
    %13 = arith.addf %10, %12 : vector<16x128xf32>
    %c0_11 = arith.constant 0 : index
    %c0_12 = arith.constant 0 : index
    %14 = vector.load %arg6[%c0_11, %c0_12] : memref<16x128xf32, #tpu.memory_space<vmem>>, vector<16x128xf32>
    tpu.vector_store %arg6[%c0_11, %c0_12], %13 {strides = array<i32>} : memref<16x128xf32, #tpu.memory_space<vmem>>, vector<16x128xf32>,
    return
  }
  func.func @transform_0(%arg0: i32) -> (i32, i32) {
    %c0_i32 = arith.constant 0 : i32
    %c0_i32_0 = arith.constant 0 : i32
    return %arg0, %c0_i32 : i32, i32
  }
  func.func @transform_1(%arg0: i32) -> (i32, i32) {
    %c0_i32 = arith.constant 0 : i32
    %c0_i32_0 = arith.constant 0 : i32
    %c0_i32_1 = arith.constant 0 : i32
    return %c0_i32, %c0_i32_0 : i32, i32
  }
  func.func @transform_2(%arg0: i32) -> (i32, i32) {
    %c0_i32 = arith.constant 0 : i32
    %c0_i32_0 = arith.constant 0 : i32
    %c0_i32_1 = arith.constant 0 : i32
    return %c0_i32, %c0_i32_0 : i32, i32
  }
  func.func @transform_3(%arg0: i32) -> (i32, i32) {
    %c0_i32 = arith.constant 0 : i32
    %c0_i32_0 = arith.constant 0 : i32
    %c0_i32_1 = arith.constant 0 : i32
    return %c0_i32, %c0_i32_0 : i32, i32
  }
  func.func @transform_4(%arg0: i32) -> (i32, i32) {
    %c0_i32 = arith.constant 0 : i32
    %c0_i32_0 = arith.constant 0 : i32
    %c0_i32_1 = arith.constant 0 : i32
    return %c0_i32, %c0_i32_0 : i32, i32
  }
  func.func @transform_5(%arg0: i32) -> (i32, i32) {
    %c0_i32 = arith.constant 0 : i32
    %c0_i32_0 = arith.constant 0 : i32
    return %arg0, %c0_i32 : i32, i32
  }
}

</mosaic_0001>

<bundles_post_ra>
// kernel: tpu_custom_call.1
= control target key start
LH: loop header
LB: loop body
LE: loop exit
PB: predicated region body
PF: predicated region fallthrough
CT: control target
= control target key end

     0   :  { %10 = vsyncpa [#allocation3], 0  ;;  %s566_s0 = inlined_call_operand.hbm [shape: bf16[16,128], index: 0, kind: input, shape index: {}]   ;;  %s567_s1 = inlined_call_operand.hbm [shape: bf16[128,128], index: 1, kind: input, shape index: {}]   ;;  %s568_s2 = inlined_call_operand.vmem [shape: f32[1,128], index: 2, kind: input, shape index: {}]   ;;  %s569_s3 = inlined_call_operand.hbm [shape: bf16[128,128], index: 3, kind: input, shape index: {}]   ;;  %s570_s4 = inlined_call_operand.vmem [shape: f32[1,128], index: 4, kind: input, shape index: {}]   ;;  %s571_s5 = inlined_call_operand.hbm [shape: f32[16,128], index: 5, kind: output, shape index: {}]  }
   0x1   :  { %11 = vsyncpa [#allocation6], 0 }
   0x2   :  { %12 = vsyncpa [#allocation4], 0  ;;  %s508_s18 = smov [#allocation5]   ;;  %s509_s20 = smov [#allocation2]  }
   0x3   :  { %s30_s19 = sshll.u32 %s508_s18, 4  ;;  %s18_s21 = sshll.u32 %s509_s20, 4  ;;  %s31_s19 = int_to_ptr.vmem [resolvable:$true] %s30_s19  ;;  %s19_s21 = int_to_ptr.vmem [resolvable:$true] %s18_s21 }
   0x4   :  { %s430_s22 = scalar_lea.vmem %s31_s19, 1024  ;;  %p435_p1 = scmp.lt.s32.totalorder %s31_s19, %s31_s19 }
   0x5   :  { %p431_p0 = scmp.ne.s32.totalorder %s31_s19, %s430_s22  ;;  %p436_p2 = scmp.lt.s32.totalorder %s430_s22, %s430_s22 }
   0x7   :  { %p437_p3 = por %p436_p2, %p435_p1 }
   0x9   :  { %p438_p4 = pnand %p437_p3, %p431_p0 }
   0xb   :  { %441 = shalt.err (!%p438_p4)
}
   0xc   :  { %s510_s23 = smov 64   ;;  %s511_s24 = smov 4  }
   0xd   :  { %36 = dma.hbm_to_vmem [thread:$0]  %s567_s1, 1024, %s31_s19, [#allocation6], %s510_s23, %s510_s23, %s511_s24  }
   0xe   :  { %s450_s27 = scalar_lea.vmem %s19_s21, 128  ;;  %p455_p6 = scmp.lt.s32.totalorder %s19_s21, %s19_s21 }
   0xf   :  { %p451_p5 = scmp.ne.s32.totalorder %s19_s21, %s450_s27  ;;  %p456_p7 = scmp.lt.s32.totalorder %s450_s27, %s450_s27 }
  0x11   :  { %p457_p8 = por %p456_p7, %p455_p6 }
  0x13   :  { %p458_p9 = pnand %p457_p8, %p451_p5 }
  0x15   :  { %461 = shalt.err (!%p458_p9)
}
  0x16   :  { %24 = dma.hbm_to_vmem [thread:$0]  %s566_s0, 128, %s19_s21, [#allocation3], %s510_s23, %s510_s23, %s511_s24  }
  0x17   :  { %s512_s30 = smov [#allocation7]  }
  0x18   :  { %s44_s6 = sshll.u32 %s512_s30, 4  ;;  %s45_s6 = int_to_ptr.vmem [resolvable:$true] %s44_s6 }
  0x19   :  { %s470_s7 = scalar_lea.vmem %s45_s6, 1024  ;;  %p475_p11 = scmp.lt.s32.totalorder %s45_s6, %s45_s6 }
  0x1a   :  { %p471_p10 = scmp.ne.s32.totalorder %s45_s6, %s470_s7  ;;  %p476_p12 = scmp.lt.s32.totalorder %s470_s7, %s470_s7 }
  0x1c   :  { %p477_p13 = por %p476_p12, %p475_p11 }
  0x1e   :  { %p478_p0 = pnand %p477_p13, %p471_p10 }
  0x20   :  { %481 = shalt.err (!%p478_p0)
}
  0x21   :  { %50 = dma.hbm_to_vmem [thread:$0]  %s569_s3, 1024, %s45_s6, [#allocation6], %s510_s23, %s510_s23, %s511_s24  }
  0x22   :  { %502 = dma.done.wait [#allocation3], 128  }
  0x23   :  { %503 = vsyncadd [#allocation3], 4294967168 }
  0x24   :  { %504 = dma.done.wait [#allocation6], 2048  }
  0x25   :  { %505 = vsyncadd [#allocation6], 4294965248  ;;  %v513_v0 = vmov 0.0   ;;  %vm514_vm0 = vmmov 0   ;;  %v405_v1 = vld [vmem:[#allocation5 + $0x38] sm:$0xff]   ;;  %v406_v2 = vld [vmem:[#allocation5 + $0x30] sm:$0xff]  }
  0x26   :  { %355 = vmatprep.subr.bf16.mxu0 %v513_v0  ;;  %371 = vmatprep.mubr.msk.bf16.mxu0 %vm514_vm0, %v513_v0  ;;  %v414_v3 = vld [vmem:[#allocation7 + $0x38] sm:$0xff]   ;;  %v407_v4 = vld [vmem:[#allocation5 + $0x28] sm:$0xff]   ;;  %v415_v5 = vld [vmem:[#allocation7 + $0x30] sm:$0xff]   ;;  %s515_s11 = smov [#allocation8]  }
  0x27   :  { %375 = vmatprep.subr.bf16.mxu1 %v513_v0  ;;  %391 = vmatprep.mubr.msk.bf16.mxu1 %vm514_vm0, %v513_v0  ;;  %v408_v6 = vld [vmem:[#allocation5 + $0x20] sm:$0xff]   ;;  %v416_v7 = vld [vmem:[#allocation7 + $0x28] sm:$0xff]   ;;  %v409_v8 = vld [vmem:[#allocation5 + $0x18] sm:$0xff]   ;;  %s305_s12 = sshll.u32 %s515_s11, 4  ;;  %s306_s12 = int_to_ptr.vmem [resolvable:$true] %s305_s12 }
  0x28   :  { %356 = vmatpush3.bf16.xpose.msra.mxu0 %v405_v1  ;;  %376 = vmatpush3.bf16.xpose.msra.mxu1 %v414_v3  ;;  %v417_v9 = vld [vmem:[#allocation7 + $0x20] sm:$0xff]   ;;  %v410_v10 = vld [vmem:[#allocation5 + $0x10] sm:$0xff]   ;;  %v418_v11 = vld [vmem:[#allocation7 + $0x18] sm:$0xff]   ;;  %p487_p2 = scmp.lt.s32.totalorder %s306_s12, %s306_s12 }
  0x29   :  { %357 = vmatprep.subr.bf16.mxu0 %v513_v0  ;;  %377 = vmatprep.subr.bf16.mxu1 %v513_v0  ;;  %v411_v12 = vld [vmem:[#allocation5 + $0x8] sm:$0xff]   ;;  %v419_v13 = vld [vmem:[#allocation7 + $0x10] sm:$0xff]   ;;  %v412_v14 = vld [vmem:[#allocation5] sm:$0xff]  }
  0x2a   :  { %v420_v15 = vld [vmem:[#allocation7 + $0x8] sm:$0xff]   ;;  %v413_v16 = vld [vmem:[#allocation2] sm:$0xff]   ;;  %v421_v17 = vld [vmem:[#allocation7] sm:$0xff]  }
  0x2b   :  { %v318_v18 = vld [vmem:[%s568_s2] ss:$0 sm:$0xff]  ;;  %s482_s2 = scalar_lea.vmem %s306_s12, 256 }
  0x2c   :  { %v328_v28 = vld [vmem:[%s570_s4] ss:$0 sm:$0xff]  ;;  %p483_p1 = scmp.ne.s32.totalorder %s306_s12, %s482_s2  ;;  %p488_p3 = scmp.lt.s32.totalorder %s482_s2, %s482_s2 }
  0x2e   :  { %p489_p4 = por %p488_p3, %p487_p2 }
  0x30   :  { %358 = vmatpush3.bf16.xpose.msra.mxu0 %v406_v2  ;;  %378 = vmatpush3.bf16.xpose.msra.mxu1 %v415_v5  ;;  %p490_p5 = pnand %p489_p4, %p483_p1 }
  0x31   :  { %359 = vmatprep.subr.bf16.mxu0 %v513_v0  ;;  %379 = vmatprep.subr.bf16.mxu1 %v513_v0 }
  0x38   :  { %360 = vmatpush3.bf16.xpose.msra.mxu0 %v407_v4  ;;  %380 = vmatpush3.bf16.xpose.msra.mxu1 %v416_v7 }
  0x39   :  { %361 = vmatprep.subr.bf16.mxu0 %v513_v0  ;;  %381 = vmatprep.subr.bf16.mxu1 %v513_v0 }
  0x40   :  { %362 = vmatpush3.bf16.xpose.msra.mxu0 %v408_v6  ;;  %382 = vmatpush3.bf16.xpose.msra.mxu1 %v417_v9 }
  0x41   :  { %363 = vmatprep.subr.bf16.mxu0 %v513_v0  ;;  %383 = vmatprep.subr.bf16.mxu1 %v513_v0 }
  0x48   :  { %364 = vmatpush3.bf16.xpose.msra.mxu0 %v409_v8  ;;  %384 = vmatpush3.bf16.xpose.msra.mxu1 %v418_v11 }
  0x49   :  { %365 = vmatprep.subr.bf16.mxu0 %v513_v0  ;;  %385 = vmatprep.subr.bf16.mxu1 %v513_v0 }
  0x50   :  { %366 = vmatpush3.bf16.xpose.msra.mxu0 %v410_v10  ;;  %386 = vmatpush3.bf16.xpose.msra.mxu1 %v419_v13 }
  0x51   :  { %367 = vmatprep.subr.bf16.mxu0 %v513_v0  ;;  %387 = vmatprep.subr.bf16.mxu1 %v513_v0 }
  0x58   :  { %368 = vmatpush3.bf16.xpose.msra.mxu0 %v411_v12  ;;  %388 = vmatpush3.bf16.xpose.msra.mxu1 %v420_v15 }
  0x59   :  { %369 = vmatprep.subr.bf16.mxu0 %v513_v0  ;;  %389 = vmatprep.subr.bf16.mxu1 %v513_v0 }
  0x60   :  { %370 = vmatpush3.bf16.xpose.msra.mxu0 %v412_v14  ;;  %390 = vmatpush3.bf16.xpose.msra.mxu1 %v421_v17 }
  0x67   :  { %372 = vmatmul.mubr.bf16.vlgmr.msra.gmra.mxu0 %v413_v16 }
 0x127   :  { %v176_v19 = vpop.f32.mrf.mxu0 }
 0x128   :  { %v177_v21 = vadd.f32 %v318_v18, %v176_v19 }
 0x129   :  { %v373_v20 = vpop.f32.mrf.mxu0 }
 0x12a   :  { %v183_v25 = vmax.f32 %v177_v21, 0.0 }
 0x12b   :  { %v179_v22 = vpop.f32.mrf.mxu0 }
 0x12c   :  { %v180_v23 = vadd.f32 %v318_v18, %v179_v22 }
 0x12d   :  { %v374_v24 = vpop.f32.mrf.mxu0 }
 0x12e   :  { %v184_v26 = vmax.f32 %v180_v23, 0.0 }
 0x130   :  { %v185_v27 = vpack.c.bf16 %v184_v26, %v183_v25 }
 0x132   :  { %392 = vmatmul.mubr.bf16.vlgmr.msra.gmra.mxu1 %v185_v27 }
 0x1f2   :  { %v291_v29 = vpop.f32.mrf.mxu1 }
 0x1f3   :  { %v292_v30 = vadd.f32 %v328_v28, %v291_v29 }
 0x1f4   :  { %v393_v31 = vpop.f32.mrf.mxu1 }
 0x1f5   :  { %298 = vst [vmem:[#allocation8] sm:$0xff] %v292_v30 }
 0x1f6   :  { %v294_v32 = vpop.f32.mrf.mxu1 }
 0x1f7   :  { %v295_v33 = vadd.f32 %v328_v28, %v294_v32 }
 0x1f8   :  { %v394_v34 = vpop.f32.mrf.mxu1 }
 0x1f9   :  { %299 = vst [vmem:[#allocation8 + $0x8] sm:$0xff] %v295_v33 }
 0x1fa   :  { %493 = shalt.err (!%p490_p5)
}
 0x1fb   :  { %s516_s13 = smov 128   ;;  %s517_s4 = smov 8  }
 0x1fc   :  { %311 = dma.vmem_to_hbm [thread:$0]  %s306_s12, 256, %s571_s5, [#allocation4], %s516_s13, %s516_s13, %s517_s4  }
 0x1fd   :  { %506 = dma.done.wait [#allocation4], 256  }
 0x1fe   :  { %507 = vsyncadd [#allocation4], 4294967040 }
 0x1ff   :  { %315 = vsyncpa [#allocation3], 1 }
 0x200   :  { %316 = vsyncpa [#allocation6], 1 }
 0x201   :  { %317 = vsyncpa [#allocation4], 1 }

</bundles_post_ra>
